<compile_context>
chip_gen: v6e
topology: v6e:2x2x1
jax: 0.10.0
libtpu: 0.0.40
codegen_flags: <defaults>
</compile_context>

<pallas_src>
from functools import partial

import jax
import jax.numpy as jnp
from jax.experimental import pallas as pl
from jax.experimental.pallas import tpu as pltpu


def _focal_bce_kernel(logits_ref, targets_ref, out_ref, *, n_rows, tile_n, inv_total):
    i = pl.program_id(0)

    # Accumulator lives in the resident SMEM output (same block for every grid step).
    @pl.when(i == 0)
    def _():
        out_ref[0, 0] = jnp.float32(0.0)

    x = logits_ref[...].astype(jnp.float32)
    t = targets_ref[...].astype(jnp.float32)

    # Row-wise softmax over the class axis (last dim), with log_p via log-softmax.
    m = jnp.max(x, axis=-1, keepdims=True)
    xs = x - m
    e = jnp.exp(xs)
    sum_e = jnp.sum(e, axis=-1, keepdims=True)
    log_sum_e = jnp.log(sum_e)
    log_p = xs - log_sum_e                                  # = log(softmax(x))
    p = e * pl.reciprocal(sum_e, approx=False)              # softmax(x)

    # PyTorch BCELoss clamps each log term at -100.
    log_p = jnp.maximum(log_p, -100.0)
    log_1mp = jnp.maximum(jnp.log(1.0 - p), -100.0)

    # -(t*log_p + (1-t)*log_1mp), algebraically folded.
    loss = -(log_1mp + t * (log_p - log_1mp))

    # Mask rows that fall past the real batch (ragged last tile reads padded garbage;
    # the select also stops any NaN/Inf from those rows propagating into the sum).
    row_ids = i * tile_n + jax.lax.broadcasted_iota(jnp.int32, loss.shape, 0)
    loss = jnp.where(row_ids < n_rows, loss, 0.0)

    out_ref[0, 0] += jnp.sum(loss)

    @pl.when(i == pl.num_programs(0) - 1)
    def _():
        out_ref[0, 0] = out_ref[0, 0] * inv_total


def _pick_tile_n(n, c, dtype_bytes, vmem_budget_bytes=16 * 1024 * 1024):
    """Pick a row tile that double-buffers comfortably within VMEM on all generations
    (v7x default scoped VMEM is the tightest)."""
    c_padded = max(((c + 127) // 128) * 128, 128)           # lanes are padded to 128
    per_row = 2 * 2 * c_padded * dtype_bytes                 # 2 inputs x 2 pipeline bufs
    tile = max(8, vmem_budget_bytes // per_row)
    tile = min(tile, 1024, n)
    return int(tile)


def _normalize_tile_n(tile_n, n):
    if tile_n >= n:
        return n                                             # full batch: always legal
    return max(8, (tile_n // 8) * 8)                         # multiple of 8 sublanes


def focal_loss_multilabel(logits, targets, *, tile_n=None):
    """logits, targets: (N, C) float arrays (f32 or bf16). Returns scalar f32 loss."""
    assert logits.shape == targets.shape and logits.ndim == 2
    n, c = logits.shape

    if tile_n is None:
        tile_n = _pick_tile_n(n, c, jnp.dtype(logits.dtype).itemsize)
    tile_n = _normalize_tile_n(int(tile_n), n)
    num_tiles = pl.cdiv(n, tile_n)

    kernel = partial(
        _focal_bce_kernel,
        n_rows=n,
        tile_n=tile_n,
        inv_total=1.0 / float(n * c),
    )

    out = pl.pallas_call(
        kernel,
        out_shape=jax.ShapeDtypeStruct((1, 1), jnp.float32),
        grid=(num_tiles,),
        in_specs=[
            pl.BlockSpec((tile_n, c), lambda i: (i, 0)),
            pl.BlockSpec((tile_n, c), lambda i: (i, 0)),
        ],
        out_specs=pl.BlockSpec(memory_space=pltpu.SMEM),
        compiler_params=pltpu.CompilerParams(
            dimension_semantics=("arbitrary",),
        ),
    )(logits, targets)
    return out[0, 0]


def _reference(logits, targets):
    p = jax.nn.softmax(logits.astype(jnp.float32), axis=1)
    log_p = jnp.maximum(jnp.log(p), -100.0)
    log_1mp = jnp.maximum(jnp.log(1.0 - p), -100.0)
    t = targets.astype(jnp.float32)
    return jnp.mean(-(t * log_p + (1.0 - t) * log_1mp))


if __name__ == "__main__":
    key = jax.random.PRNGKey(0)
    k1, k2, k3, k4 = jax.random.split(key, 4)

    # Module-consistent small shapes: num_label = 20 classes.
    N, C = 8, 20
    logits = jax.random.normal(k1, (N, C), dtype=jnp.float32)
    targets = jax.random.uniform(k2, (N, C), dtype=jnp.float32)  # BCE targets in [0, 1]

    loss = jax.block_until_ready(focal_loss_multilabel(logits, targets))
    ref = _reference(logits, targets)
    assert jnp.allclose(loss, ref, rtol=1e-5, atol=1e-5), (loss, ref)

    # Larger case with a ragged last tile to exercise the grid accumulator + row mask.
    N2, C2 = 300, 20
    logits2 = jax.random.normal(k3, (N2, C2), dtype=jnp.float32)
    targets2 = jax.random.uniform(k4, (N2, C2), dtype=jnp.float32)
    loss2 = jax.block_until_ready(focal_loss_multilabel(logits2, targets2, tile_n=128))
    ref2 = _reference(logits2, targets2)
    assert jnp.allclose(loss2, ref2, rtol=1e-5, atol=1e-5), (loss2, ref2)

    print("KERNEL_OK")
</pallas_src>

<mosaic_0001>
module attributes {stable_mosaic.version = 11 : i64} {
  func.func @_focal_bce_kernel(%arg0: i32, %arg1: memref<8x20xf32, #tpu.memory_space<vmem>>, %arg2: memref<8x20xf32, #tpu.memory_space<vmem>>, %arg3: memref<1x1xf32, #tpu.memory_space<smem>>) attributes {dimension_semantics = [#tpu.dimension_semantics<arbitrary>], iteration_bounds = array<i64: 1>, scalar_prefetch = 0 : i64, scratch_operands = 0 : i64, tpu.core_type = #tpu.core_type<tc>, window_params = [{transform_indices = @transform_0, window_bounds = array<i64: 8, 20>}, {transform_indices = @transform_1, window_bounds = array<i64: 8, 20>}, {transform_indices = @transform_2, window_bounds = array<i64: 1, 1>}]} {
    %c0_i32 = arith.constant 0 : i32
    %0 = arith.cmpi eq, %arg0, %c0_i32 : i32
    %1 = arith.extui %0 : i1 to i32
    %c0_i32_0 = arith.constant 0 : i32
    %2 = arith.cmpi ne, %1, %c0_i32_0 : i32
    scf.if %2 {
      %cst_18 = arith.constant 0.000000e+00 : f32
      %c0_19 = arith.constant 0 : index
      %c0_20 = arith.constant 0 : index
      %48 = memref.load %arg3[%c0_19, %c0_20] : memref<1x1xf32, #tpu.memory_space<smem>>
      memref.store %cst_18, %arg3[%c0_19, %c0_20] : memref<1x1xf32, #tpu.memory_space<smem>>
    } else {
    }
    %c0 = arith.constant 0 : index
    %c0_1 = arith.constant 0 : index
    %3 = vector.load %arg1[%c0, %c0_1] : memref<8x20xf32, #tpu.memory_space<vmem>>, vector<8x20xf32>
    %c0_2 = arith.constant 0 : index
    %c0_3 = arith.constant 0 : index
    %4 = vector.load %arg2[%c0_2, %c0_3] : memref<8x20xf32, #tpu.memory_space<vmem>>, vector<8x20xf32>
    %cst = arith.constant dense<0xFF800000> : vector<8xf32>
    %5 = vector.multi_reduction <maximumf>, %3, %cst [1] : vector<8x20xf32> to vector<8xf32>
    %6 = vector.shape_cast %5 : vector<8xf32> to vector<8x1xf32>
    %7 = vector.broadcast %6 : vector<8x1xf32> to vector<8x20xf32>
    %8 = arith.subf %3, %7 : vector<8x20xf32>
    %9 = math.exp %8 : vector<8x20xf32>
    %cst_4 = arith.constant dense<0.000000e+00> : vector<8xf32>
    %10 = vector.multi_reduction <add>, %9, %cst_4 [1] : vector<8x20xf32> to vector<8xf32>
    %11 = vector.shape_cast %10 : vector<8xf32> to vector<8x1xf32>
    %12 = math.log %11 : vector<8x1xf32>
    %13 = vector.broadcast %12 : vector<8x1xf32> to vector<8x20xf32>
    %14 = arith.subf %8, %13 : vector<8x20xf32>
    %15 = tpu.reciprocal %11 : vector<8x1xf32> -> vector<8x1xf32>
    %16 = vector.broadcast %15 : vector<8x1xf32> to vector<8x20xf32>
    %17 = arith.mulf %9, %16 : vector<8x20xf32>
    %cst_5 = arith.constant -1.000000e+02 : f32
    %18 = vector.broadcast %cst_5 : f32 to vector<8x20xf32>
    %19 = arith.maximumf %14, %18 : vector<8x20xf32>
    %cst_6 = arith.constant 1.000000e+00 : f32
    %20 = vector.broadcast %cst_6 : f32 to vector<8x20xf32>
    %21 = arith.subf %20, %17 : vector<8x20xf32>
    %22 = math.log %21 : vector<8x20xf32>
    %cst_7 = arith.constant -1.000000e+02 : f32
    %23 = vector.broadcast %cst_7 : f32 to vector<8x20xf32>
    %24 = arith.maximumf %22, %23 : vector<8x20xf32>
    %25 = arith.subf %19, %24 : vector<8x20xf32>
    %26 = arith.mulf %4, %25 : vector<8x20xf32>
    %27 = arith.addf %24, %26 : vector<8x20xf32>
    %cst_8 = arith.constant 0.000000e+00 : f32
    %28 = vector.broadcast %cst_8 : f32 to vector<8x20xf32>
    %29 = arith.subf %28, %27 : vector<8x20xf32>
    %c8_i32 = arith.constant 8 : i32
    %30 = arith.muli %arg0, %c8_i32 : i32
    %31 = tpu.iota {dimensions = array<i32: 0>} : vector<8x20xi32>
    %32 = vector.broadcast %30 : i32 to vector<8x20xi32>
    %33 = arith.addi %32, %31 : vector<8x20xi32>
    %c8_i32_9 = arith.constant 8 : i32
    %34 = vector.broadcast %c8_i32_9 : i32 to vector<8x20xi32>
    %35 = arith.cmpi slt, %33, %34 : vector<8x20xi32>
    %cst_10 = arith.constant 0.000000e+00 : f32
    %36 = vector.broadcast %cst_10 : f32 to vector<8x20xf32>
    %37 = arith.select %35, %29, %36 : vector<8x20xi1>, vector<8x20xf32>
    %c0_11 = arith.constant 0 : index
    %c0_12 = arith.constant 0 : index
    %38 = memref.load %arg3[%c0_11, %c0_12] : memref<1x1xf32, #tpu.memory_space<smem>>
    %39 = vector.shape_cast %37 : vector<8x20xf32> to vector<1x8x20xf32>
    %cst_13 = arith.constant dense<0.000000e+00> : vector<1xf32>
    %40 = vector.multi_reduction <add>, %39, %cst_13 [1, 2] : vector<1x8x20xf32> to vector<1xf32>
    %41 = vector.shape_cast %40 : vector<1xf32> to vector<1x1x1xf32>
    %42 = vector.extract %41[0, 0, 0] : f32 from vector<1x1x1xf32>
    %43 = arith.addf %38, %42 : f32
    %c0_14 = arith.constant 0 : index
    %c0_15 = arith.constant 0 : index
    %44 = memref.load %arg3[%c0_14, %c0_15] : memref<1x1xf32, #tpu.memory_space<smem>>
    memref.store %43, %arg3[%c0_14, %c0_15] : memref<1x1xf32, #tpu.memory_space<smem>>
    %c0_i32_16 = arith.constant 0 : i32
    %45 = arith.cmpi eq, %arg0, %c0_i32_16 : i32
    %46 = arith.extui %45 : i1 to i32
    %c0_i32_17 = arith.constant 0 : i32
    %47 = arith.cmpi ne, %46, %c0_i32_17 : i32
    scf.if %47 {
      %c0_18 = arith.constant 0 : index
      %c0_19 = arith.constant 0 : index
      %48 = memref.load %arg3[%c0_18, %c0_19] : memref<1x1xf32, #tpu.memory_space<smem>>
      %cst_20 = arith.constant 6.250000e-03 : f32
      %49 = arith.mulf %48, %cst_20 : f32
      %c0_21 = arith.constant 0 : index
      %c0_22 = arith.constant 0 : index
      %50 = memref.load %arg3[%c0_21, %c0_22] : memref<1x1xf32, #tpu.memory_space<smem>>
      memref.store %49, %arg3[%c0_21, %c0_22] : memref<1x1xf32, #tpu.memory_space<smem>>
    } else {
    }
    return
  }
  func.func @transform_0(%arg0: i32) -> (i32, i32) {
    %c0_i32 = arith.constant 0 : i32
    %c0_i32_0 = arith.constant 0 : i32
    return %arg0, %c0_i32 : i32, i32
  }
  func.func @transform_1(%arg0: i32) -> (i32, i32) {
    %c0_i32 = arith.constant 0 : i32
    %c0_i32_0 = arith.constant 0 : i32
    return %arg0, %c0_i32 : i32, i32
  }
  func.func @transform_2(%arg0: i32) -> (i32, i32) {
    %c0_i32 = arith.constant 0 : i32
    %c0_i32_0 = arith.constant 0 : i32
    %c0_i32_1 = arith.constant 0 : i32
    return %c0_i32, %c0_i32_0 : i32, i32
  }
}

</mosaic_0001>

<bundles_post_ra>
// kernel: tpu_custom_call.1
= control target key start
LH: loop header
LB: loop body
LE: loop exit
PB: predicated region body
PF: predicated region fallthrough
CT: control target
= control target key end

     0   :  { %7 = vsyncpa [#allocation3], 0  ;;  %s208_s0 = inlined_call_operand.hbm [shape: f32[8,20], index: 0, kind: input, shape index: {}]   ;;  %s209_s1 = inlined_call_operand.hbm [shape: f32[8,20], index: 1, kind: input, shape index: {}]   ;;  %s210_s2 = inlined_call_operand.hbm [shape: f32[1,1], index: 2, kind: output, shape index: {}]  }
   0x1   :  { %8 = vsyncpa [#allocation6], 0 }
   0x2   :  { %9 = vsyncpa [#allocation4], 0  ;;  %s178_s9 = smov [#allocation2]   ;;  %s179_s11 = smov [#allocation5]  }
   0x3   :  { %s16_s10 = sshll.u32 %s178_s9, 4  ;;  %s26_s12 = sshll.u32 %s179_s11, 4  ;;  %s17_s10 = int_to_ptr.vmem [resolvable:$true] %s16_s10  ;;  %s27_s12 = int_to_ptr.vmem [resolvable:$true] %s26_s12 }
   0x4   :  { %s132_s13 = scalar_lea.vmem %s17_s10, 128  ;;  %p137_p1 = scmp.lt.s32.totalorder %s17_s10, %s17_s10 }
   0x5   :  { %p133_p0 = scmp.ne.s32.totalorder %s17_s10, %s132_s13  ;;  %p138_p2 = scmp.lt.s32.totalorder %s132_s13, %s132_s13 }
   0x7   :  { %p139_p3 = por %p138_p2, %p137_p1 }
   0x9   :  { %p140_p4 = pnand %p139_p3, %p133_p0 }
   0xb   :  { %143 = shalt.err (!%p140_p4)
}
   0xc   :  { %19 = dma.hbm_to_vmem [thread:$0]  %s208_s0, 128, %s17_s10, [#allocation3]  }
   0xd   :  { %s152_s16 = scalar_lea.vmem %s27_s12, 128  ;;  %p157_p6 = scmp.lt.s32.totalorder %s27_s12, %s27_s12 }
   0xe   :  { %p153_p5 = scmp.ne.s32.totalorder %s27_s12, %s152_s16  ;;  %p158_p7 = scmp.lt.s32.totalorder %s152_s16, %s152_s16 }
  0x10   :  { %p159_p8 = por %p158_p7, %p157_p6 }
  0x12   :  { %p160_p9 = pnand %p159_p8, %p153_p5 }
  0x14   :  { %163 = shalt.err (!%p160_p9)
}
  0x15   :  { %29 = dma.hbm_to_vmem [thread:$0]  %s209_s1, 128, %s27_s12, [#allocation6]  }
  0x16   :  { %172 = dma.done.wait [#allocation3], 128  }
  0x17   :  { %173 = vsyncadd [#allocation3], 4294967168 }
  0x18   :  { %174 = dma.done.wait [#allocation6], 128  }
  0x19   :  { %175 = vsyncadd [#allocation6], 4294967168  ;;  %vm44_vm0 = vcmask 162816   ;;  %v42_v0 = vld [vmem:[#allocation2] sm:$0xff]  ;;  %v43_v18 = vld [vmem:[#allocation5] sm:$0xff]  ;;  %s180_s19 = smov [#allocation7]  }
  0x1a   :  { %v45_v1 = vsel %vm44_vm0, %v42_v0, -inf }
  0x1b   :  { %46 = vmax.xlane.f32.xlu0 %v45_v1 }
  0xa4   :  { %v47_v2 = vpop.xlane.xlu0 %46 }
  0xa5   :  { %v48_v3 = vsub.f32 %v42_v0, %v47_v2 }
  0xa7   :  { %v49_v4 = vmul.f32 1.442695, %v48_v3 }
  0xa9   :  { %116 = vpow2.f32 %v49_v4 }
  0xb6   :  { %v117_v5 = vpop.eup %116 }
  0xb7   :  { %v51_v6 = vsel %vm44_vm0, %v117_v5, 0.0 }
  0xb8   :  { %52 = vadd.xlane.f32.xlu0 %v51_v6 }
 0x141   :  { %v53_v7 = vpop.xlane.xlu0 %52 }
 0x142   :  { %118 = vrcp.f32 %v53_v7 }
 0x143   :  { %120 = vlog2.f32 %v53_v7 }
 0x14f   :  { %v119_v8 = vpop.eup %118 }
 0x150   :  { %v58_v9 = vmul.f32 %v119_v8, %v117_v5  ;;  %v121_v11 = vpop.eup %120 }
 0x151   :  { %v55_v12 = vmul.f32 0.6931472, %v121_v11 }
 0x152   :  { %v60_v10 = vsub.f32 1.0, %v58_v9 }
 0x153   :  { %v56_v13 = vsub.f32 %v48_v3, %v55_v12 }
 0x154   :  { %122 = vlog2.f32 %v60_v10 }
 0x155   :  { %v59_v16 = vmax.f32 %v56_v13, -100.0 }
 0x161   :  { %v123_v14 = vpop.eup %122 }
 0x162   :  { %v62_v15 = vmul.f32 0.6931472, %v123_v14 }
 0x164   :  { %v63_v17 = vmax.f32 %v62_v15, -100.0 }
 0x166   :  { %v64_v19 = vsub.f32 %v59_v16, %v63_v17 }
 0x168   :  { %v65_v20 = vmul.f32 %v64_v19, %v43_v18 }
 0x16a   :  { %v66_v21 = vadd.f32 %v65_v20, %v63_v17 }
 0x16c   :  { %v67_v22 = vsub.f32 0.0, %v66_v21 }
 0x16e   :  { %v76_v23 = vsel %vm44_vm0, %v67_v22, 0.0 }
 0x16f   :  { %77 = vadd.xlane.f32.xlu1 %v76_v23 }
 0x1f8   :  { %v78_v24 = vpop.xlane.xlu1 %77 }
 0x1f9   :  { %v79_v25 = vrot.slane %v78_v24, 4 }
 0x1fb   :  { %v80_v26 = vadd.f32 %v79_v25, %v78_v24 }
 0x1fd   :  { %v81_v27 = vrot.slane %v80_v26, 2 }
 0x1ff   :  { %v82_v28 = vadd.f32 %v81_v27, %v80_v26 }
 0x201   :  { %v83_v29 = vrot.slane %v82_v28, 1 }
 0x203   :  { %v84_v30 = vadd.f32 %v83_v29, %v82_v28 }
 0x205   :  { %110 = vpush %v84_v30 }
 0x236   :  { %s111_s0 = spop %110 }
 0x237   :  { %s93_s1 = smul.f32 0.00625, %s111_s0 }
 0x239   :  { %94 = sst [smem:[#allocation7]] %s93_s1 }
 0x23a   :  { %102 = dma.smem_to_hbm %s180_s19, 16, %s210_s2, [#allocation4]  }
 0x23b   :  { %176 = dma.done.wait [#allocation4], 16  }
 0x23c   :  { %177 = vsyncadd [#allocation4], 4294967280 }
 0x23d   :  { %106 = sfence }
 0x23e   :  { %107 = vsyncpa [#allocation3], 1 }
 0x23f   :  { %108 = vsyncpa [#allocation6], 1 }
 0x240   :  { %109 = vsyncpa [#allocation4], 1 }

</bundles_post_ra>
